<compile_context>
chip_gen: v7x
topology: tpu7x:2x2x1
jax: 0.10.0
libtpu: 0.0.40
codegen_flags: <defaults>
</compile_context>

<pallas_src>
import jax
import jax.numpy as jnp
from jax.experimental import pallas as pl
from jax.experimental.pallas import tpu as pltpu

LEAKY_SLOPE = 0.01  # nn.LeakyReLU default negative_slope


# ----------------------------------------------------------------------------
# Kernel: one (batch, spatial-tile, Cout-tile) step of the strided conv + act
# ----------------------------------------------------------------------------
def _conv3x3s2_kernel(x_ref, w_ref, b_ref, o_ref):
    """Fused stride-2 3x3 conv tile.

    x_ref : (1, 9*Cin, TS)  bf16  -- stride-2 im2col patch, K order = (cin, kh*3+kw)
    w_ref : (TCO, 9*Cin)    bf16  -- OIHW weight flattened over (cin, kh, kw)
    b_ref : (TCO, 1)        f32
    o_ref : (1, TCO, TS)    f32   -- lane dim = spatial (lane-dense stores)
    """
    y = jnp.dot(w_ref[...], x_ref[0], preferred_element_type=jnp.float32)
    y = y + b_ref[...]
    y = jnp.where(y >= 0.0, y, LEAKY_SLOPE * y)          # LeakyReLU epilogue (f32)
    o_ref[0] = y.astype(o_ref.dtype)


# ----------------------------------------------------------------------------
# Tiling helpers
# ----------------------------------------------------------------------------
def _cout_tiling(cout):
    """Output-channel tiling: full block if <=128, else 128-wide tiles (pad)."""
    if cout <= 128:
        return cout, cout
    if cout % 128 == 0:
        return cout, 128
    return ((cout + 127) // 128) * 128, 128


def _spatial_tiling(m, cin, tco, budget=16 << 20):
    """Spatial tile TS (lane dim): full if it fits, else multiple of 128."""
    per_elem = 2 * (9 * cin * 2 + tco * 4)            # dbl-buffered in + out bytes
    fixed = 2 * (tco * 9 * cin * 2 + tco * 4)         # dbl-buffered weight + bias
    ts_max = max(128, (budget - fixed) // per_elem)
    if m <= ts_max:
        return m, m
    ts = max(128, (ts_max // 128) * 128)
    m_pad = ((m + ts - 1) // ts) * ts
    return ts, m_pad


# ----------------------------------------------------------------------------
# Forward wrapper (PyTorch-facing NCHW / OIHW layouts)
# ----------------------------------------------------------------------------
def downsampling_forward(x, weight, bias):
    """DownSampling.forward: LeakyReLU(Conv2d(C, C, 3, stride=2, padding=1)(x)).

    x      : (B, C, H, W) f32 NCHW
    weight : (C, C, 3, 3) f32 OIHW (torch Conv2d layout)
    bias   : (C,)         f32
    returns: (B, C, ceil(H/2), ceil(W/2)) f32
    """
    B, C, H, W = x.shape
    Cout, Cin = weight.shape[0], weight.shape[1]
    assert Cin == C
    OH = (H - 1) // 2 + 1
    OW = (W - 1) // 2 + 1
    M = OH * OW
    K = 9 * C

    cout_pad, tco = _cout_tiling(Cout)
    TS, m_pad = _spatial_tiling(M, C, tco)

    # Layout plumbing (stays NCHW): pad once, slice the nine quarter-resolution
    # stride-2 tap planes, stack along K = (cin, kh*3+kw), flatten spatial.
    # TODO(synk): pull the tap extraction into the kernel with overlapping manual
    # DMAs (memory_space=pl.ANY) to drop the ~1.1x patch materialization.
    xp = jnp.pad(x, ((0, 0), (0, 0), (1, 1), (1, 1))).astype(jnp.bfloat16)
    taps = [xp[:, :, dy:dy + 2 * OH:2, dx:dx + 2 * OW:2]
            for dy in range(3) for dx in range(3)]
    patch = jnp.stack(taps, axis=2).reshape(B, K, M)      # (B, 9*Cin, OH*OW)
    if m_pad != M:
        patch = jnp.pad(patch, ((0, 0), (0, 0), (0, m_pad - M)))

    wk = weight.reshape(Cout, K).astype(jnp.bfloat16)      # OIHW flatten == (cin,kh,kw)
    bk = bias.reshape(Cout, 1).astype(jnp.float32)
    if cout_pad != Cout:
        wk = jnp.pad(wk, ((0, cout_pad - Cout), (0, 0)))
        bk = jnp.pad(bk, ((0, cout_pad - Cout), (0, 0)))

    # Explicit VMEM budget: double-buffered input/weight/bias/output blocks.
    need = 2 * (K * TS * 2 + tco * K * 2 + tco * 4 + tco * TS * 4)
    vmem_limit = int(min(48 << 20, max(2 * need, 16 << 20)))

    out = pl.pallas_call(
        _conv3x3s2_kernel,
        out_shape=jax.ShapeDtypeStruct((B, cout_pad, m_pad), jnp.float32),
        grid=(B, m_pad // TS, cout_pad // tco),
        in_specs=[
            pl.BlockSpec((1, K, TS), lambda b, s, j: (b, 0, s)),   # patch (resident over j)
            pl.BlockSpec((tco, K), lambda b, s, j: (j, 0)),        # weights
            pl.BlockSpec((tco, 1), lambda b, s, j: (j, 0)),        # bias
        ],
        out_specs=pl.BlockSpec((1, tco, TS), lambda b, s, j: (b, j, s)),
        compiler_params=pltpu.CompilerParams(
            dimension_semantics=("parallel", "parallel", "parallel"),
            vmem_limit_bytes=vmem_limit),
    )(patch, wk, bk)

    return out[:, :Cout, :M].reshape(B, Cout, OH, OW)


if __name__ == "__main__":
    B, C, H, W = 2, 4, 16, 16
    key = jax.random.PRNGKey(0)
    kx, kw, kb = jax.random.split(key, 3)
    x = jax.random.normal(kx, (B, C, H, W), jnp.float32)
    bound = 1.0 / float((9 * C) ** 0.5)        # torch Conv2d default init range
    weight = jax.random.uniform(kw, (C, C, 3, 3), jnp.float32, -bound, bound)
    bias = jax.random.uniform(kb, (C,), jnp.float32, -bound, bound)

    fwd = jax.jit(downsampling_forward)
    y = fwd(x, weight, bias)
    jax.block_until_ready(y)

    # Reference: XLA conv on the same bf16-quantized operands (f32 accumulation).
    ref = jax.lax.conv_general_dilated(
        x.astype(jnp.bfloat16), weight.astype(jnp.bfloat16),
        window_strides=(2, 2), padding=((1, 1), (1, 1)),
        dimension_numbers=("NCHW", "OIHW", "NCHW"),
        preferred_element_type=jnp.float32) + bias[None, :, None, None]
    ref = jnp.where(ref >= 0.0, ref, LEAKY_SLOPE * ref)

    assert y.shape == (B, C, H // 2, W // 2), y.shape
    assert bool(jnp.all(jnp.isfinite(y)))
    assert float(jnp.max(jnp.abs(y - ref))) < 5e-2
    print("KERNEL_OK")
</pallas_src>

<mosaic_0001>
module attributes {stable_mosaic.version = 11 : i64} {
  func.func @_conv3x3s2_kernel(%arg0: i32, %arg1: i32, %arg2: i32, %arg3: memref<1x36x64xbf16, #tpu.memory_space<vmem>>, %arg4: memref<4x36xbf16, #tpu.memory_space<vmem>>, %arg5: memref<4x1xf32, #tpu.memory_space<vmem>>, %arg6: memref<1x4x64xf32, #tpu.memory_space<vmem>>) attributes {dimension_semantics = [#tpu.dimension_semantics<parallel>, #tpu.dimension_semantics<parallel>, #tpu.dimension_semantics<parallel>], iteration_bounds = array<i64: 2, 1, 1>, scalar_prefetch = 0 : i64, scratch_operands = 0 : i64, tpu.core_type = #tpu.core_type<tc>, window_params = [{transform_indices = @transform_0, window_bounds = array<i64: 1, 36, 64>}, {transform_indices = @transform_1, window_bounds = array<i64: 4, 36>}, {transform_indices = @transform_2, window_bounds = array<i64: 4, 1>}, {transform_indices = @transform_3, window_bounds = array<i64: 1, 4, 64>}]} {
    %c0 = arith.constant 0 : index
    %c0_0 = arith.constant 0 : index
    %0 = vector.load %arg4[%c0, %c0_0] : memref<4x36xbf16, #tpu.memory_space<vmem>>, vector<4x36xbf16>
    %c0_1 = arith.constant 0 : index
    %c0_2 = arith.constant 0 : index
    %c0_3 = arith.constant 0 : index
    %1 = vector.load %arg3[%c0_1, %c0_2, %c0_3] : memref<1x36x64xbf16, #tpu.memory_space<vmem>>, vector<1x36x64xbf16>
    %2 = vector.shape_cast %1 : vector<1x36x64xbf16> to vector<36x64xbf16>
    %cst = arith.constant dense<0.000000e+00> : vector<4x64xf32>
    %3 = tpu.matmul %0, %2, %cst {dimension_numbers = #tpu.dot_dimension_numbers<[1], [0], [0], [1], [0, 0, 1, 1], [], []>} : vector<4x36xbf16>, vector<36x64xbf16>, vector<4x64xf32> -> vector<4x64xf32>
    %c0_4 = arith.constant 0 : index
    %c0_5 = arith.constant 0 : index
    %4 = vector.load %arg5[%c0_4, %c0_5] : memref<4x1xf32, #tpu.memory_space<vmem>>, vector<4x1xf32>
    %5 = vector.broadcast %4 : vector<4x1xf32> to vector<4x64xf32>
    %6 = arith.addf %3, %5 : vector<4x64xf32>
    %cst_6 = arith.constant 0.000000e+00 : f32
    %7 = vector.broadcast %cst_6 : f32 to vector<4x64xf32>
    %8 = arith.cmpf oge, %6, %7 : vector<4x64xf32>
    %cst_7 = arith.constant 0.00999999977 : f32
    %9 = vector.broadcast %cst_7 : f32 to vector<4x64xf32>
    %10 = arith.mulf %9, %6 : vector<4x64xf32>
    %11 = arith.select %8, %6, %10 : vector<4x64xi1>, vector<4x64xf32>
    %c0_8 = arith.constant 0 : index
    %c0_9 = arith.constant 0 : index
    %c0_10 = arith.constant 0 : index
    %12 = vector.load %arg6[%c0_8, %c0_9, %c0_10] : memref<1x4x64xf32, #tpu.memory_space<vmem>>, vector<1x4x64xf32>
    %13 = vector.shape_cast %12 : vector<1x4x64xf32> to vector<4x64xf32>
    %14 = vector.shape_cast %11 : vector<4x64xf32> to vector<1x4x64xf32>
    tpu.vector_store %arg6[%c0_8, %c0_9, %c0_10], %14 {strides = array<i32>} : memref<1x4x64xf32, #tpu.memory_space<vmem>>, vector<1x4x64xf32>,
    return
  }
  func.func @transform_0(%arg0: i32, %arg1: i32, %arg2: i32) -> (i32, i32, i32) {
    %c0_i32 = arith.constant 0 : i32
    %c0_i32_0 = arith.constant 0 : i32
    return %arg0, %c0_i32, %arg1 : i32, i32, i32
  }
  func.func @transform_1(%arg0: i32, %arg1: i32, %arg2: i32) -> (i32, i32) {
    %c0_i32 = arith.constant 0 : i32
    %c0_i32_0 = arith.constant 0 : i32
    return %arg2, %c0_i32 : i32, i32
  }
  func.func @transform_2(%arg0: i32, %arg1: i32, %arg2: i32) -> (i32, i32) {
    %c0_i32 = arith.constant 0 : i32
    %c0_i32_0 = arith.constant 0 : i32
    return %arg2, %c0_i32 : i32, i32
  }
  func.func @transform_3(%arg0: i32, %arg1: i32, %arg2: i32) -> (i32, i32, i32) {
    %c0_i32 = arith.constant 0 : i32
    return %arg0, %arg2, %arg1 : i32, i32, i32
  }
}

</mosaic_0001>

<bundles_post_ra>
// kernel: downsampling_forward.1
= control target key start
LH: loop header
LB: loop body
LE: loop exit
PB: predicated region body
PF: predicated region fallthrough
CT: control target
= control target key end

     0   :  { %s559_s12 = smov 0   ;;  %s561_s13 = smov 0   ;;  %s598_s0 = inlined_call_operand.vmem [shape: bf16[2,36,64], index: 0, kind: input, shape index: {}]   ;;  %s599_s1 = inlined_call_operand.vmem [shape: bf16[4,36], index: 1, kind: input, shape index: {}]   ;;  %s600_s2 = inlined_call_operand.vmem [shape: f32[4,1], index: 2, kind: input, shape index: {}]   ;;  %s601_s3 = inlined_call_operand.vmem [shape: f32[2,4,64], index: 3, kind: output, shape index: {}]  }
   0x1   :  { %s563_s14 = smov 0  }
   0x2 LB: > { %s32_s15 = sadd.s32 1, %s530_s13  ;;  %p457_p0 = scmp.ge.s32.totalorder %s534_s14, 1  ;;  %s534_s14 = sphi %s563_s14, %s13_s14   ;;  %s530_s13 = sphi %s561_s13, %s603_s13   ;;  %s526_s12 = sphi %s559_s12, %s602_s12  }
   0x3   : > { %p34_p1 = scmp.ge.s32.totalorder %s32_s15, 2  ;;  %p183_p2 = scmp.lt.s32.totalorder %s534_s14, 3 }
   0x5   : > { %s605_s15 = smov (%p34_p1, %s32_s15), 0  ;;  %p184_p3 = pnand %p457_p0, %p183_p2 }
   0x6   : > { %p223_p4 = scmp.lt.s32.totalorder (!%p184_p3), %s526_s12, 1  ;;  %v536_v0 = vmov (!%p184_p3), 0.0   ;;  %vm537_vm0 = vmmov (!%p184_p3), 0   ;;  %v256_v1 = vld [vmem:[%s600_s2] sm:$0xf] (!%p184_p3)  ;;  %v538_v2 = vmov (!%p184_p3), 0  }
   0x7   : > { %187 = sbr.rel (%p184_p3) target bundleno = 248 (0xf8), region = 32  ;;  %470 = vmatprep.subr.bf16.mxu0 (!%p184_p3), %v536_v0  ;;  %476 = vmatprep.mubr.msk.bf16.mxu0 (!%p184_p3), %vm537_vm0, %v536_v0  ;;  %vm281_vm1 = vcmask (!%p184_p3), 1041408   ;;  %v250_v7 = vld [vmem:[%s599_s1] sm:$0x3] (!%p184_p3)  ;;  %vm277_vm2 = vcmask (!%p184_p3), 293888   ;;  %vm328_vm4 = vcmask (!%p184_p3), 519168  }
   0x8   : > { %508 = vset.pattern.permute.xlu0 (!%p184_p3), %v538_v2 }
   0x9   : > { %259 = vperm.xlu0 (!%p184_p3), %508, %v256_v1  }
   0xe   : > { %s607_s12 = smov (!%p223_p4, %s526_s12), 1 }
   0xf   : > { %s480_s18 = smul.u32 20, %s607_s12  ;;  %s459_s24 = sshll.u32 %s607_s12, 2 }
  0x10   : > { %s248_s27 = scalar_lea.vmem %s601_s3, %s459_s24 }
  0x11   : > { %s230_s21 = scalar_lea.vmem %s598_s0, %s480_s18 }
  0x12   : > { %v509_v3 = vld [vmem:[%s230_s21] sm:$0xff]   ;;  %v510_v4 = vld [vmem:[%s230_s21 + $0x8] sm:$0xff]   ;;  %v511_v5 = vld [vmem:[%s230_s21 + $0x10] ss:$0 sps:$4 sm:$0x33]  }
  0x13   : > { %471 = vmatpush3.bf16.msra.mxu0 %v509_v3  ;;  %v283_v6 = vsel %vm281_vm1, %v511_v5, 0 }
  0x14   : > { %472 = vmatprep.subr.bf16.mxu0 %v536_v0 }
  0x17   : > { %473 = vmatpush3.bf16.msra.mxu0 %v510_v4 }
  0x18   : > { %474 = vmatprep.subr.bf16.mxu0 %v536_v0 }
  0x1b   : > { %475 = vmatpush3.bf16.msra.mxu0 %v283_v6 }
  0x1e   : > { %477 = vmatmul.mubr.msk.bf16.vlgmr.msra.gmra.mrb[0].mxu0 %vm277_vm2, %v250_v7 }
  0x88   : > { %v260_v8 = vpop.permute.xlu0 %259 }
  0xf1   : > { %v319_v9 = vpop.f32.mrb[0].mxu0 }
  0xf2   : > { %v320_v10 = vadd.f32 %v319_v9, %v260_v8  ;;  %v478_v11 = vpop.f32.mrb[1].mxu0 }
  0xf3   : > { %v322_v12 = vpop.f32.mrb[2].mxu0 }
  0xf4   : > { %vm325_vm3 = vcmp.ge.f32.partialorder %v320_v10, 0.0  ;;  %v326_v13 = vmul.f32 0.01, %v320_v10  ;;  %v479_v14 = vpop.f32.mrb[3].mxu0 }
  0xf6   : > { %v327_v15 = vsel %vm325_vm3, %v320_v10, %v326_v13 }
  0xf7   : > { %329 = vst.msk [vmem:[%s248_s27] sm:$0xf] %vm328_vm4, %v327_v15 }
  0xf8 PF: > { %s13_s14 = sadd.s32 1, %s534_s14   ;;  %s602_s12 = smov %s530_s13 }
  0xf9   : > { %p10_p5 = scmp.ge.s32.totalorder %s13_s14, 4   ;;  %s603_s13 = smov %s605_s15 }
  0xfb   :  { %12 = sbr.rel (!%p10_p5) target bundleno = 2 (0x2), region = 68 }

</bundles_post_ra>
